<compile_context>
chip_gen: v6e
topology: v6e:2x2x1
jax: 0.10.0
libtpu: 0.0.40
codegen_flags: <defaults>
</compile_context>

<pallas_src>
import functools

import jax
import jax.numpy as jnp
from jax.experimental import pallas as pl
from jax.experimental.pallas import tpu as pltpu


NEG_SLOPE = 0.2        # PyG GATv2Conv default negative_slope
MASK_NEG = -1e30       # "-inf" stand-in for masked logits
LANE = 128             # lane width / output-channel padding
TILE_I = 128           # target-node (row) tile
TILE_J = 128           # source-node (col) tile


def _round_up(v, m):
    return (v + m - 1) // m * m


# ---------------------------------------------------------------------------
# Kernel 1: fused linear projection  x @ [Wl | Wr]   (bf16 MXU, f32 accumulate)
# ---------------------------------------------------------------------------
def _proj_kernel(x_ref, w_ref, out_ref):
    x = x_ref[...].astype(jnp.bfloat16)
    out_ref[...] = jnp.dot(x, w_ref[...], preferred_element_type=jnp.float32)


@functools.partial(jax.jit, static_argnames=("tile",))
def fused_projection(x, w_bf16, *, tile=TILE_I):
    n, f_in = x.shape
    d2 = w_bf16.shape[1]
    return pl.pallas_call(
        _proj_kernel,
        out_shape=jax.ShapeDtypeStruct((n, d2), jnp.float32),
        grid=(n // tile,),
        in_specs=[
            pl.BlockSpec((tile, f_in), lambda i: (i, 0)),
            pl.BlockSpec((f_in, d2), lambda i: (0, 0)),
        ],
        out_specs=pl.BlockSpec((tile, d2), lambda i: (i, 0)),
        compiler_params=pltpu.CompilerParams(
            dimension_semantics=("parallel",),
            vmem_limit_bytes=32 * 1024 * 1024,
        ),
        cost_estimate=pl.CostEstimate(
            flops=2 * n * f_in * d2,
            transcendentals=0,
            bytes_accessed=n * f_in * 4 + f_in * d2 * 2 + n * d2 * 4,
        ),
    )(x, w_bf16)


# ---------------------------------------------------------------------------
# Kernel 2: GATv2 attention + aggregation, online masked softmax over j-tiles
# ---------------------------------------------------------------------------
def _make_attn_kernel(num_heads, out_channels, tile_i, tile_j, d_pad,
                      valid_width, activation):

    def kernel(att_ref, xr_ref, xlT_ref, xl_ref, adj_ref, bias_ref, out_ref,
               m_scr, l_scr, acc_scr):
        j = pl.program_id(1)
        nj = pl.num_programs(1)

        @pl.when(j == 0)
        def _init():
            m_scr[...] = jnp.full_like(m_scr, MASK_NEG)
            l_scr[...] = jnp.zeros_like(l_scr)
            acc_scr[...] = jnp.zeros_like(acc_scr)

        xr = xr_ref[...]                          # [TI, HC] f32 (target feats)
        xlT = xlT_ref[...]                        # [HC, TJ] f32 (source, j on lanes)
        mask = adj_ref[...] > 0                   # [TI, TJ] bool (bf16 adjacency), 1 compare/tile
        xl_b = xl_ref[...].astype(jnp.bfloat16)   # [TJ, HC] MXU operand

        for h in range(num_heads):
            # ---- attention logits: j on lanes, no [TI, TJ, C] intermediate
            logits = jnp.zeros((tile_i, tile_j), jnp.float32)
            for c in range(out_channels):
                col = h * out_channels + c
                s = xr[:, col:col + 1] + xlT[col:col + 1, :]      # [TI, TJ]
                s = jnp.where(s > 0, s, NEG_SLOPE * s)            # leaky relu
                logits = logits + att_ref[h, c] * s
            logits = jnp.where(mask, logits, MASK_NEG)

            # ---- online masked softmax (normalization deferred)
            m_old = m_scr[h]                                      # [TI, 1]
            m_new = jnp.maximum(m_old, jnp.max(logits, axis=1, keepdims=True))
            scale = jnp.exp(m_old - m_new)
            p = jnp.where(mask, jnp.exp(logits - m_new), 0.0)     # [TI, TJ]
            l_scr[h] = scale * l_scr[h] + jnp.sum(p, axis=1, keepdims=True)
            m_scr[h] = m_new

            # ---- aggregation: bf16 MXU, f32 accumulate, written straight into
            #      the lane-offset slice of the shared accumulator (no concat)
            lo = h * out_channels
            hi = lo + out_channels
            agg = jnp.dot(p.astype(jnp.bfloat16), xl_b[:, lo:hi],
                          preferred_element_type=jnp.float32)     # [TI, C]
            acc_scr[:, lo:hi] = scale * acc_scr[:, lo:hi] + agg

        @pl.when(j == nj - 1)
        def _finalize():
            # deferred softmax normalization: one EUP reciprocal per (row, head)
            for h in range(num_heads):
                lo = h * out_channels
                hi = lo + out_channels
                inv = pl.reciprocal(l_scr[h], approx=True)        # [TI, 1]
                acc_scr[:, lo:hi] = acc_scr[:, lo:hi] * inv

            y = acc_scr[...] + bias_ref[...]                      # [TI, D_pad]

            if activation == "elu":
                # exp(min(y,0)) avoids wasted/overflowing exp on positive y.
                y = jnp.where(y > 0, y, jnp.exp(jnp.minimum(y, 0.0)) - 1.0)
            elif activation == "log_softmax":
                cols = jax.lax.broadcasted_iota(jnp.int32, (tile_i, d_pad), 1)
                valid = cols < valid_width
                ym = jnp.where(valid, y, MASK_NEG)
                mx = jnp.max(ym, axis=1, keepdims=True)
                z = ym - mx
                lse = jnp.log(jnp.sum(jnp.where(valid, jnp.exp(z), 0.0),
                                      axis=1, keepdims=True))
                y = z - lse

            out_ref[...] = y                                      # lane-dense store

    return kernel


@functools.partial(jax.jit,
                   static_argnames=("num_heads", "out_channels", "activation",
                                    "d_pad"))
def gatv2_attention(att, x_r, x_lT, x_l, adj, bias, *, num_heads, out_channels,
                    activation, d_pad):
    n_pad = x_r.shape[0]
    hc = num_heads * out_channels
    kernel = _make_attn_kernel(num_heads, out_channels, TILE_I, TILE_J, d_pad,
                               hc, activation)
    return pl.pallas_call(
        kernel,
        out_shape=jax.ShapeDtypeStruct((n_pad, d_pad), jnp.float32),
        grid=(n_pad // TILE_I, n_pad // TILE_J),
        in_specs=[
            pl.BlockSpec(memory_space=pltpu.MemorySpace.SMEM),      # att [H, C]
            pl.BlockSpec((TILE_I, hc), lambda i, j: (i, 0)),        # x_r  (targets)
            pl.BlockSpec((hc, TILE_J), lambda i, j: (0, j)),        # x_l^T (sources, j on lanes)
            pl.BlockSpec((TILE_J, hc), lambda i, j: (j, 0)),        # x_l  (aggregation operand)
            pl.BlockSpec((TILE_I, TILE_J), lambda i, j: (i, j)),    # adj  (bf16 mask)
            pl.BlockSpec((1, d_pad), lambda i, j: (0, 0)),          # bias
        ],
        out_specs=pl.BlockSpec((TILE_I, d_pad), lambda i, j: (i, 0)),
        scratch_shapes=[
            pltpu.VMEM((num_heads, TILE_I, 1), jnp.float32),   # m (running max)
            pltpu.VMEM((num_heads, TILE_I, 1), jnp.float32),   # l (running denom)
            pltpu.VMEM((TILE_I, d_pad), jnp.float32),          # acc (all heads)
        ],
        compiler_params=pltpu.CompilerParams(
            dimension_semantics=("parallel", "arbitrary"),
            vmem_limit_bytes=32 * 1024 * 1024,
        ),
        cost_estimate=pl.CostEstimate(
            flops=6 * num_heads * n_pad * n_pad * out_channels,
            transcendentals=num_heads * n_pad * n_pad,
            bytes_accessed=n_pad * n_pad * 2 + 3 * n_pad * hc * 4
                           + n_pad * d_pad * 4,
        ),
    )(att, x_r, x_lT, x_l, adj, bias)


# ---------------------------------------------------------------------------
# Parameters / graph preprocessing / forward
# ---------------------------------------------------------------------------
def _glorot(key, shape):
    fan_in, fan_out = shape[0], shape[-1]
    lim = (6.0 / (fan_in + fan_out)) ** 0.5
    return jax.random.uniform(key, shape, jnp.float32, -lim, lim)


def init_gatv2_params(key, dim_in, dim_h, dim_out, num_layers, heads):
    """GATv2Conv-shaped params; Wl|Wr fused, input dim zero-padded to the
    (lane-dense) padded width of the previous layer's output."""
    dims = [(dim_in, dim_h)]
    for _ in range(num_layers - 2):
        dims.append((dim_h * heads, dim_h))
    dims.append((dim_h * heads, dim_out))

    params = []
    prev_pad = dim_in
    for li, (f_in, c) in enumerate(dims):
        key, k1, k2, k3 = jax.random.split(key, 4)
        hc = heads * c
        w = jnp.concatenate([_glorot(k1, (f_in, hc)),
                             _glorot(k2, (f_in, hc))], axis=1)    # [f_in, 2*hc]
        f_in_pad = dim_in if li == 0 else prev_pad
        if f_in_pad > f_in:
            w = jnp.pad(w, ((0, f_in_pad - f_in), (0, 0)))        # zero rows for padded inputs
        d_pad = _round_up(hc, LANE)
        params.append(dict(
            w=w.astype(jnp.bfloat16),                  # bf16 MXU operand in HBM
            att=_glorot(k3, (heads, c)),
            bias=jnp.zeros((1, d_pad), jnp.float32),   # PyG zero-init bias (padded)
            heads=heads, out_channels=c, d_pad=d_pad,
        ))
        prev_pad = d_pad
    return params


def build_adjacency(edge_index, num_nodes, num_pad):
    """Dense bf16 mask: adj[i, j] = 1 iff edge j -> i, plus self loops.
    Note: duplicate edges collapse to a single entry (dense-mask semantics)."""
    src, dst = edge_index[0], edge_index[1]
    adj = jnp.zeros((num_pad, num_pad), jnp.float32)
    adj = adj.at[dst, src].set(1.0)
    adj = jnp.maximum(adj, jnp.eye(num_pad, dtype=jnp.float32))   # self loops
    return adj.astype(jnp.bfloat16)


def gatv2_forward(params, x, edge_index):
    n = x.shape[0]
    n_pad = _round_up(n, max(TILE_I, TILE_J))
    x = jnp.pad(x, ((0, n_pad - n), (0, 0)))
    adj = build_adjacency(edge_index, n, n_pad)

    for li, p in enumerate(params):
        last = li == len(params) - 1
        # F.dropout(x, training=False) == identity.
        hc = p["heads"] * p["out_channels"]
        x_lr = fused_projection(x, p["w"])            # [n_pad, 2*hc] f32
        x_l = x_lr[:, :hc]                            # source transform (messages)
        x_r = x_lr[:, hc:]                            # target transform
        x_lT = x_l.T                                  # [hc, n_pad] (j on lanes)
        x = gatv2_attention(
            p["att"], x_r, x_lT, x_l, adj, p["bias"],
            num_heads=p["heads"], out_channels=p["out_channels"],
            activation=("log_softmax" if last else "elu"),
            d_pad=p["d_pad"],
        )                                             # [n_pad, d_pad]

    out_dim = params[-1]["heads"] * params[-1]["out_channels"]
    return x[:n, :out_dim]


if __name__ == "__main__":
    # Small, GATv2-consistent shapes.
    N = 16            # nodes
    DIM_IN = 8
    DIM_H = 8
    DIM_OUT = 4
    HEADS = 4
    NUM_LAYERS = 3
    NUM_EDGES = 32

    key = jax.random.PRNGKey(0)
    kx, ke1, ke2, kp = jax.random.split(key, 4)

    x = jax.random.normal(kx, (N, DIM_IN), jnp.float32)
    src = jax.random.randint(ke1, (NUM_EDGES,), 0, N, jnp.int32)
    dst = jax.random.randint(ke2, (NUM_EDGES,), 0, N, jnp.int32)
    edge_index = jnp.stack([src, dst], axis=0)              # [2, E]

    params = init_gatv2_params(kp, DIM_IN, DIM_H, DIM_OUT, NUM_LAYERS, HEADS)

    out = gatv2_forward(params, x, edge_index)              # [N, HEADS*DIM_OUT]
    out = jax.block_until_ready(out)

    assert out.shape == (N, HEADS * DIM_OUT)
    # log_softmax rows must exponentiate-and-sum to ~1.
    row_sums = jnp.sum(jnp.exp(out), axis=1)
    assert bool(jnp.all(jnp.abs(row_sums - 1.0) < 1e-3))
    print("KERNEL_OK")
</pallas_src>

<mosaic_0001>
module attributes {stable_mosaic.version = 11 : i64} {
  func.func @_proj_kernel(%arg0: i32, %arg1: memref<128x8xf32, #tpu.memory_space<vmem>>, %arg2: memref<8x64xbf16, #tpu.memory_space<vmem>>, %arg3: memref<128x64xf32, #tpu.memory_space<vmem>>) attributes {dimension_semantics = [#tpu.dimension_semantics<parallel>], iteration_bounds = array<i64: 1>, scalar_prefetch = 0 : i64, scratch_operands = 0 : i64, tpu.core_type = #tpu.core_type<tc>, window_params = [{transform_indices = @transform_0, window_bounds = array<i64: 128, 8>}, {pipeline_mode = #tpu.pipeline_mode<synchronous>, transform_indices = @transform_1, window_bounds = array<i64: 8, 64>}, {transform_indices = @transform_2, window_bounds = array<i64: 128, 64>}]} {
    %c0 = arith.constant 0 : index
    %c0_0 = arith.constant 0 : index
    %0 = vector.load %arg1[%c0, %c0_0] : memref<128x8xf32, #tpu.memory_space<vmem>>, vector<128x8xf32>
    %1 = arith.truncf %0 : vector<128x8xf32> to vector<128x8xbf16>
    %c0_1 = arith.constant 0 : index
    %c0_2 = arith.constant 0 : index
    %2 = vector.load %arg2[%c0_1, %c0_2] : memref<8x64xbf16, #tpu.memory_space<vmem>>, vector<8x64xbf16>
    %cst = arith.constant dense<0.000000e+00> : vector<128x64xf32>
    %3 = tpu.matmul %1, %2, %cst {dimension_numbers = #tpu.dot_dimension_numbers<[1], [0], [0], [1], [0, 0, 1, 1], [], []>} : vector<128x8xbf16>, vector<8x64xbf16>, vector<128x64xf32> -> vector<128x64xf32>
    %c0_3 = arith.constant 0 : index
    %c0_4 = arith.constant 0 : index
    %4 = vector.load %arg3[%c0_3, %c0_4] : memref<128x64xf32, #tpu.memory_space<vmem>>, vector<128x64xf32>
    tpu.vector_store %arg3[%c0_3, %c0_4], %3 {strides = array<i32>} : memref<128x64xf32, #tpu.memory_space<vmem>>, vector<128x64xf32>,
    return
  }
  func.func @transform_0(%arg0: i32) -> (i32, i32) {
    %c0_i32 = arith.constant 0 : i32
    %c0_i32_0 = arith.constant 0 : i32
    return %arg0, %c0_i32 : i32, i32
  }
  func.func @transform_1(%arg0: i32) -> (i32, i32) {
    %c0_i32 = arith.constant 0 : i32
    %c0_i32_0 = arith.constant 0 : i32
    %c0_i32_1 = arith.constant 0 : i32
    return %c0_i32, %c0_i32_0 : i32, i32
  }
  func.func @transform_2(%arg0: i32) -> (i32, i32) {
    %c0_i32 = arith.constant 0 : i32
    %c0_i32_0 = arith.constant 0 : i32
    return %arg0, %c0_i32 : i32, i32
  }
}

</mosaic_0001>

<bundles_post_ra>
// kernel: fused_projection.1
= control target key start
LH: loop header
LB: loop body
LE: loop exit
PB: predicated region body
PF: predicated region fallthrough
CT: control target
= control target key end

     0   :  { %vm62_vm0 = vcmask 1043456   ;;  %vm37_vm1 = vcmask 64512   ;;  %vm163_vm2 = vcmask 523264   ;;  %s361_s1 = inlined_call_operand.vmem [shape: bf16[8,64], index: 1, kind: input, shape index: {}]   ;;  %s362_s0 = inlined_call_operand.vmem [shape: f32[128,8], index: 0, kind: input, shape index: {}]   ;;  %s363_s2 = inlined_call_operand.vmem [shape: f32[128,64], index: 2, kind: output, shape index: {}]  }
   0x1   :  { %v36_v0 = vld [vmem:[%s361_s1] sm:$0xf]  ;;  %v13_v2 = vld [vmem:[%s362_s0 + $0x8] sm:$0xff]  ;;  %v14_v7 = vld [vmem:[%s362_s0 + $0x10] sm:$0xff] }
   0x2   :  { %v12_v1 = vld [vmem:[%s362_s0] sm:$0xff]  ;;  %221 = vmatprep.subr.msk.bf16.mxu0 %vm62_vm0, %v36_v0  ;;  %222 = vmatprep.subr.msk.bf16.mxu1 %vm62_vm0, %v36_v0  ;;  %v64_v3 = vsel %vm62_vm0, %v36_v0, 0  ;;  %v21_v6 = vld [vmem:[%s362_s0 + $0x48] sm:$0xff]  ;;  %v15_v9 = vld [vmem:[%s362_s0 + $0x18] sm:$0xff] }
   0x3   :  { %v28_v4 = vpack.c.bf16 %v13_v2, %v12_v1  ;;  %v20_v5 = vld [vmem:[%s362_s0 + $0x40] sm:$0xff]  ;;  %202 = vmatpush3.bf16.msra.mxu0 %v64_v3  ;;  %220 = vmatpush3.bf16.msra.mxu1 %v64_v3  ;;  %v22_v10 = vld [vmem:[%s362_s0 + $0x50] sm:$0xff]  ;;  %v23_v11 = vld [vmem:[%s362_s0 + $0x58] sm:$0xff]  ;;  %v29_v12 = vpack.c.bf16 %v15_v9, %v14_v7 }
   0x4   :  { %v32_v8 = vpack.c.bf16 %v21_v6, %v20_v5  ;;  %v33_v13 = vpack.c.bf16 %v23_v11, %v22_v10  ;;  %v16_v14 = vld [vmem:[%s362_s0 + $0x20] sm:$0xff]  ;;  %v17_v15 = vld [vmem:[%s362_s0 + $0x28] sm:$0xff]  ;;  %v18_v20 = vld [vmem:[%s362_s0 + $0x30] sm:$0xff] }
   0x5   :  { %203 = vmatprep.mubr.msk.bf16.mxu0 %vm37_vm1, %v28_v4  ;;  %v24_v16 = vld [vmem:[%s362_s0 + $0x60] sm:$0xff]  ;;  %v30_v17 = vpack.c.bf16 %v17_v15, %v16_v14  ;;  %v25_v18 = vld [vmem:[%s362_s0 + $0x68] sm:$0xff]  ;;  %v19_v21 = vld [vmem:[%s362_s0 + $0x38] sm:$0xff] }
   0x6   :  { %211 = vmatprep.mubr.msk.bf16.mxu1 %vm37_vm1, %v32_v8  ;;  %204 = vmatmul.mubr.msk.bf16.vlgmr.msra.gmra.mxu0 %vm37_vm1, %v29_v12  ;;  %v34_v19 = vpack.c.bf16 %v25_v18, %v24_v16  ;;  %v26_v22 = vld [vmem:[%s362_s0 + $0x70] sm:$0xff]  ;;  %v27_v23 = vld [vmem:[%s362_s0 + $0x78] sm:$0xff]  ;;  %v31_v24 = vpack.c.bf16 %v19_v21, %v18_v20 }
   0x7   :  { %212 = vmatmul.mubr.msk.bf16.vlgmr.msra.gmra.mxu1 %vm37_vm1, %v33_v13  ;;  %207 = vmatprep.mubr.msk.bf16.mxu0 %vm37_vm1, %v30_v17  ;;  %v35_v25 = vpack.c.bf16 %v27_v23, %v26_v22 }
   0x8   :  { %215 = vmatprep.mubr.msk.bf16.mxu1 %vm37_vm1, %v34_v19 }
   0xe   :  { %208 = vmatmul.mubr.msk.bf16.gmra.mxu0 %vm37_vm1, %v31_v24 }
   0xf   :  { %216 = vmatmul.mubr.msk.bf16.gmra.mxu1 %vm37_vm1, %v35_v25 }
  0xc6   :  { %v205_v26 = vpop.f32.mrf.mxu0 }
  0xc7   :  { %v213_v27 = vpop.f32.mrf.mxu1  ;;  %166 = vst.msk [vmem:[%s363_s2 + $0x10] sm:$0xff] %vm163_vm2, %v205_v26 }
  0xc8   :  { %174 = vst.msk [vmem:[%s363_s2 + $0x50] sm:$0xff] %vm163_vm2, %v213_v27  ;;  %v100_v28 = vpop.f32.mrf.mxu0 }
  0xc9   :  { %v132_v29 = vpop.f32.mrf.mxu1  ;;  %164 = vst.msk [vmem:[%s363_s2] sm:$0xff] %vm163_vm2, %v100_v28 }
  0xca   :  { %172 = vst.msk [vmem:[%s363_s2 + $0x40] sm:$0xff] %vm163_vm2, %v132_v29  ;;  %v206_v30 = vpop.f32.mrf.mxu0 }
  0xcb   :  { %v214_v31 = vpop.f32.mrf.mxu1  ;;  %167 = vst.msk [vmem:[%s363_s2 + $0x18] sm:$0xff] %vm163_vm2, %v206_v30 }
  0xcc   :  { %175 = vst.msk [vmem:[%s363_s2 + $0x58] sm:$0xff] %vm163_vm2, %v214_v31  ;;  %v103_v32 = vpop.f32.mrf.mxu0 }
  0xcd   :  { %v135_v33 = vpop.f32.mrf.mxu1  ;;  %165 = vst.msk [vmem:[%s363_s2 + $0x8] sm:$0xff] %vm163_vm2, %v103_v32 }
  0xce   :  { %173 = vst.msk [vmem:[%s363_s2 + $0x48] sm:$0xff] %vm163_vm2, %v135_v33  ;;  %v209_v34 = vpop.f32.mrf.mxu0 }
  0xcf   :  { %v217_v35 = vpop.f32.mrf.mxu1  ;;  %170 = vst.msk [vmem:[%s363_s2 + $0x30] sm:$0xff] %vm163_vm2, %v209_v34 }
  0xd0   :  { %178 = vst.msk [vmem:[%s363_s2 + $0x70] sm:$0xff] %vm163_vm2, %v217_v35  ;;  %v116_v36 = vpop.f32.mrf.mxu0 }
  0xd1   :  { %v148_v37 = vpop.f32.mrf.mxu1  ;;  %168 = vst.msk [vmem:[%s363_s2 + $0x20] sm:$0xff] %vm163_vm2, %v116_v36 }
  0xd2   :  { %176 = vst.msk [vmem:[%s363_s2 + $0x60] sm:$0xff] %vm163_vm2, %v148_v37  ;;  %v210_v38 = vpop.f32.mrf.mxu0 }
  0xd3   :  { %v218_v39 = vpop.f32.mrf.mxu1  ;;  %171 = vst.msk [vmem:[%s363_s2 + $0x38] sm:$0xff] %vm163_vm2, %v210_v38 }
  0xd4   :  { %179 = vst.msk [vmem:[%s363_s2 + $0x78] sm:$0xff] %vm163_vm2, %v218_v39  ;;  %v119_v40 = vpop.f32.mrf.mxu0 }
  0xd5   :  { %v151_v41 = vpop.f32.mrf.mxu1  ;;  %169 = vst.msk [vmem:[%s363_s2 + $0x28] sm:$0xff] %vm163_vm2, %v119_v40 }
  0xd6   :  { %177 = vst.msk [vmem:[%s363_s2 + $0x68] sm:$0xff] %vm163_vm2, %v151_v41 }

</bundles_post_ra>
